<compile_context>
chip_gen: v7x
topology: tpu7x:2x2x1
jax: 0.10.0
libtpu: 0.0.40
codegen_flags: <defaults>
</compile_context>

<pallas_src>
import functools
import math

import jax
import jax.numpy as jnp
from jax.experimental import pallas as pl
from jax.experimental.pallas import tpu as pltpu

_C1 = math.sqrt(2.0 / math.pi)      # sqrt(2/pi)
_C2 = 0.044715 * _C1                # folded coefficient: tanh(c1*x + c2*x^3)

_SINGLE_BUFFER_MIN_BYTES = 8 * 2**20  # only single-buffer weights that are big enough to matter


def _gelu_new(x):
    # GPT-2 "gelu_new" (tanh approximation), matches transformers NewGELUActivation.
    # Python-float constants are weakly typed, so this stays entirely in x.dtype.
    return 0.5 * x * (1.0 + jnp.tanh(_C1 * x + _C2 * (x * x * x)))


# --------------------------------------------------------------------------- kernels

def _mlp_kernel_resident(x_ref, wfc_ref, bfc_ref, wproj_ref, bproj_ref, o_ref,
                         *, act_dtype):
    # c_fc: x @ W_fc + b_fc  (cast x to MXU dtype in-kernel, accumulate in f32)
    x = x_ref[...].astype(wfc_ref.dtype)
    h = jnp.dot(x, wfc_ref[...], preferred_element_type=jnp.float32)
    h = h + bfc_ref[...]
    # activation: bf16 on v6e/v7x (bf16 VPU/EUP), f32 on v5e.
    h = _gelu_new(h.astype(act_dtype))
    # c_proj: gelu(h) @ W_proj + b_proj
    out = jnp.dot(h.astype(wproj_ref.dtype), wproj_ref[...],
                  preferred_element_type=jnp.float32)
    o_ref[...] = (out + bproj_ref[...]).astype(o_ref.dtype)
    # TODO(synk): training-mode residual dropout (pltpu.prng_random_bits mask) not
    # implemented; nn.Dropout in eval mode is an identity, which is what we compute.


def _mlp_kernel_streamed(x_ref, wfc_ref, bfc_ref, wproj_ref, bproj_ref, o_ref,
                         acc_ref, *, act_dtype):
    k = pl.program_id(1)

    @pl.when(k == 0)
    def _():
        acc_ref[...] = jnp.zeros_like(acc_ref)

    x = x_ref[...].astype(wfc_ref.dtype)
    h = jnp.dot(x, wfc_ref[...], preferred_element_type=jnp.float32)
    h = h + bfc_ref[...]
    h = _gelu_new(h.astype(act_dtype))          # elementwise in I -> per-chunk is exact
    acc_ref[...] += jnp.dot(h.astype(wproj_ref.dtype), wproj_ref[...],
                            preferred_element_type=jnp.float32)

    @pl.when(k == pl.num_programs(1) - 1)
    def _():
        o_ref[...] = (acc_ref[...] + bproj_ref[...]).astype(o_ref.dtype)


# --------------------------------------------------------------------------- helpers

def _vmem_limit(est_bytes):
    """Generation-aware scoped-VMEM limit: physical capacity minus headroom."""
    try:
        cap = int(pltpu.get_tpu_info().vmem_capacity_bytes)
    except Exception:
        cap = 128 * 2**20
    # Leave headroom for compiler-internal scratch / semaphores / double buffers.
    # v5e/v6e (128 MiB): up to ~112 MiB.  v7x (64 MiB/TC): capped at ~48 MiB.
    ceiling = max(32 * 2**20, cap - 16 * 2**20)
    return int(min(max(int(1.4 * est_bytes), 32 * 2**20), ceiling))


def _const_spec(shape, index_map, nbytes):
    """BlockSpec for a constant-index (resident) operand; single-buffer big weights."""
    if nbytes >= _SINGLE_BUFFER_MIN_BYTES:
        # Constant index map -> DMA'd once; one buffer halves its VMEM footprint.
        return pl.BlockSpec(shape, index_map, pipeline_mode=pl.Buffered(1))
    return pl.BlockSpec(shape, index_map)


def _has_bf16_vpu():
    try:
        kind = jax.devices()[0].device_kind.lower()
    except Exception:
        return False
    # v5e and earlier have no bf16 VPU/EUP; keep the activation in f32 there.
    return not any(t in kind for t in ("v2", "v3", "v4", "v5"))


def _choose_tm(M, tm_req):
    """Row tile over M=B*S.  No padding anywhere: either the tile equals the full
    row extent, or it is a multiple of 8 and the final block is store-masked."""
    tm_req = max(8, (int(tm_req) // 8) * 8)
    if tm_req < M:
        return tm_req                       # >=2 row tiles; final block may be ragged
    if M >= 256:
        # Split one giant tile in two so both v7x TensorCores get work.
        half = (((M + 1) // 2) + 7) // 8 * 8
        if half < M:
            return half
    return M                                # single full-extent block (any M allowed)


# --------------------------------------------------------------------------- builders

def _build_resident(M, H, I, tm, x_dtype, w_dtype, out_dtype, act_dtype):
    gm = pl.cdiv(M, tm)
    xb = jnp.dtype(x_dtype).itemsize
    wb = jnp.dtype(w_dtype).itemsize
    ob = jnp.dtype(out_dtype).itemsize
    wbytes_fc = H * I * wb
    wbytes_pj = I * H * wb
    wbuf_fc = 1 if wbytes_fc >= _SINGLE_BUFFER_MIN_BYTES else 2
    wbuf_pj = 1 if wbytes_pj >= _SINGLE_BUFFER_MIN_BYTES else 2
    est = (2 * tm * H * xb               # x tile, double buffered
           + 2 * tm * H * ob             # out tile, double buffered
           + 2 * tm * I * 4              # f32 intermediate h (+ headroom)
           + wbuf_fc * wbytes_fc + wbuf_pj * wbytes_pj
           + 4 * (I + H) * 4)            # biases

    in_specs = [
        pl.BlockSpec((tm, H), lambda i: (i, 0)),            # x row tile
        _const_spec((H, I), lambda i: (0, 0), wbytes_fc),    # c_fc weight (resident)
        _const_spec((1, I), lambda i: (0, 0), 0),            # c_fc bias
        _const_spec((I, H), lambda i: (0, 0), wbytes_pj),    # c_proj weight (resident)
        _const_spec((1, H), lambda i: (0, 0), 0),            # c_proj bias
    ]
    return pl.pallas_call(
        functools.partial(_mlp_kernel_resident, act_dtype=act_dtype),
        out_shape=jax.ShapeDtypeStruct((M, H), out_dtype),
        grid_spec=pltpu.PrefetchScalarGridSpec(
            num_scalar_prefetch=0,
            grid=(gm,),
            in_specs=in_specs,
            out_specs=pl.BlockSpec((tm, H), lambda i: (i, 0)),
        ),
        compiler_params=pltpu.CompilerParams(
            dimension_semantics=("parallel",),
            vmem_limit_bytes=_vmem_limit(est),
        ),
    )


def _build_streamed(M, H, I, tm, ti, x_dtype, w_dtype, out_dtype, act_dtype):
    gm = pl.cdiv(M, tm)
    gk = I // ti
    xb = jnp.dtype(x_dtype).itemsize
    wb = jnp.dtype(w_dtype).itemsize
    ob = jnp.dtype(out_dtype).itemsize
    est = (2 * tm * H * xb
           + 2 * tm * H * ob
           + tm * H * 4                        # f32 accumulator scratch
           + 2 * tm * ti * 4                   # f32 intermediate h chunk
           + 2 * (H * ti + ti * H) * wb        # streamed weight chunks, double buffered
           + 4 * (ti + H) * 4)

    in_specs = [
        pl.BlockSpec((tm, H), lambda i, k: (i, 0)),       # x row tile (resident across k)
        pl.BlockSpec((H, ti), lambda i, k: (0, k)),       # c_fc weight chunk
        pl.BlockSpec((1, ti), lambda i, k: (0, k)),       # c_fc bias chunk
        pl.BlockSpec((ti, H), lambda i, k: (k, 0)),       # c_proj weight chunk
        _const_spec((1, H), lambda i, k: (0, 0), 0),      # c_proj bias (constant)
    ]
    return pl.pallas_call(
        functools.partial(_mlp_kernel_streamed, act_dtype=act_dtype),
        out_shape=jax.ShapeDtypeStruct((M, H), out_dtype),
        grid_spec=pltpu.PrefetchScalarGridSpec(
            num_scalar_prefetch=0,
            grid=(gm, gk),                                # reduction axis (I chunks) last
            in_specs=in_specs,
            out_specs=pl.BlockSpec((tm, H), lambda i, k: (i, 0)),
            scratch_shapes=[pltpu.VMEM((tm, H), jnp.float32)],
        ),
        compiler_params=pltpu.CompilerParams(
            dimension_semantics=("parallel", "arbitrary"),
            vmem_limit_bytes=_vmem_limit(est),
        ),
    )


# --------------------------------------------------------------------------- wrapper

def gpt2_mlp(x, w_fc, b_fc, w_proj, b_proj, *, tm=None, ti=None,
             compute_dtype=jnp.bfloat16, act_dtype=None):
    """Fused GPT-2 MLP forward: c_proj(gelu_new(c_fc(x))); dropout is eval-mode identity.

    x: [B, S, H]; w_fc: [H, I]; b_fc: [I]; w_proj: [I, H]; b_proj: [H].
    tm: row tile over M = B*S (default 256 resident / 512 streamed).
    ti: chunk of the intermediate dim I (None => fully-resident weights).  If set it
        must divide I and be a multiple of 128 (for very large models / v7x VMEM).
    compute_dtype: MXU input dtype (bf16 default); accumulation is always f32.  For
        best performance store the weights in this dtype (avoids a per-call HBM cast).
    act_dtype: gelu dtype; default f32 on v5e, bf16 on v6e/v7x when compute is bf16.
    """
    B, S, H = x.shape
    I = w_fc.shape[1]
    M = B * S

    streamed = ti is not None and ti < I
    if ti is None:
        ti = I
    assert I % ti == 0, "ti must divide the intermediate size"
    assert ti == I or ti % 128 == 0, "streamed ti must be a multiple of 128"

    if tm is None:
        tm = 512 if streamed else 256
    tm_eff = _choose_tm(M, tm)

    cd = jnp.dtype(compute_dtype)
    # Prefer passing pre-cast (stored) parameters; casting here is a convenience
    # fallback that costs a full HBM read+write pass over the weights per call.
    w_fc_c = w_fc if w_fc.dtype == cd else w_fc.astype(cd)
    w_proj_c = w_proj if w_proj.dtype == cd else w_proj.astype(cd)
    b_fc2 = b_fc.reshape(1, I).astype(jnp.float32)
    b_proj2 = b_proj.reshape(1, H).astype(jnp.float32)

    if act_dtype is None:
        act_dtype = cd if (cd == jnp.dtype(jnp.bfloat16) and _has_bf16_vpu()) else jnp.float32

    x2d = x.reshape(M, H)   # free metadata change; dtype cast happens inside the kernel

    if streamed:
        call = _build_streamed(M, H, I, tm_eff, ti, x.dtype, cd, x.dtype, act_dtype)
    else:
        call = _build_resident(M, H, I, tm_eff, x.dtype, cd, x.dtype, act_dtype)
    out2d = call(x2d, w_fc_c, b_fc2, w_proj_c, b_proj2)
    return out2d.reshape(B, S, H)


def gpt2_mlp_ref(x, w_fc, b_fc, w_proj, b_proj):
    h = jnp.einsum("bsh,hi->bsi", x, w_fc) + b_fc
    h = _gelu_new(h)
    return jnp.einsum("bsi,ih->bsh", h, w_proj) + b_proj


# --------------------------------------------------------------------------- demo / checks

if __name__ == "__main__":
    key = jax.random.PRNGKey(0)
    kx, k1, k2, k3, k4, kx2, kx3 = jax.random.split(key, 7)

    # Small GPT2-like config: hidden_size=32, intermediate_size=4*hidden=128.
    B, S, H = 2, 8, 32
    I = 4 * H
    x = jax.random.normal(kx, (B, S, H), dtype=jnp.float32)
    w_fc = 0.02 * jax.random.normal(k1, (H, I), dtype=jnp.float32)
    b_fc = 0.02 * jax.random.normal(k2, (I,), dtype=jnp.float32)
    w_proj = 0.02 * jax.random.normal(k3, (I, H), dtype=jnp.float32)
    b_proj = 0.02 * jax.random.normal(k4, (H,), dtype=jnp.float32)

    ref = gpt2_mlp_ref(x, w_fc, b_fc, w_proj, b_proj)

    # 1) Default bf16-MXU path with pre-cast (stored) bf16 weights: no per-call weight cast.
    w_fc_bf16 = w_fc.astype(jnp.bfloat16)
    w_proj_bf16 = w_proj.astype(jnp.bfloat16)
    out = jax.block_until_ready(gpt2_mlp(x, w_fc_bf16, b_fc, w_proj_bf16, b_proj))
    assert out.shape == (B, S, H) and out.dtype == x.dtype
    assert jnp.allclose(out, ref, atol=2e-2, rtol=2e-2), "bf16 path mismatch vs reference"

    # 2) f32 compute path (structural check at tighter tolerance).
    out_f32 = jax.block_until_ready(
        gpt2_mlp(x, w_fc, b_fc, w_proj, b_proj, compute_dtype=jnp.float32))
    assert jnp.allclose(out_f32, ref, atol=2e-3, rtol=1e-2), "f32 path mismatch vs reference"

    # 3) Streamed intermediate dim (ti < I) with a non-multiple-of-8 row count (M=14).
    B2, S2, H2 = 2, 7, 32
    I2 = 256
    x2 = jax.random.normal(kx2, (B2, S2, H2), dtype=jnp.float32)
    w_fc2 = 0.02 * jax.random.normal(k1, (H2, I2), dtype=jnp.float32)
    b_fc2 = 0.02 * jax.random.normal(k2, (I2,), dtype=jnp.float32)
    w_proj2 = 0.02 * jax.random.normal(k3, (I2, H2), dtype=jnp.float32)
    b_proj2 = 0.02 * jax.random.normal(k4, (H2,), dtype=jnp.float32)
    out2 = jax.block_until_ready(
        gpt2_mlp(x2, w_fc2.astype(jnp.bfloat16), b_fc2,
                 w_proj2.astype(jnp.bfloat16), b_proj2, ti=128))
    ref2 = gpt2_mlp_ref(x2, w_fc2, b_fc2, w_proj2, b_proj2)
    assert out2.shape == (B2, S2, H2)
    assert jnp.allclose(out2, ref2, atol=2e-2, rtol=2e-2), "streamed-I path mismatch vs reference"

    # 4) Multi-tile grid with a ragged final row block (masked partial store, no padding):
    #    M = 24 rows, tm = 16 -> 2 row tiles, last one half-full.
    B3, S3 = 3, 8
    x3 = jax.random.normal(kx3, (B3, S3, H), dtype=jnp.float32)
    out3 = jax.block_until_ready(
        gpt2_mlp(x3, w_fc, b_fc, w_proj, b_proj, tm=16, compute_dtype=jnp.float32))
    ref3 = gpt2_mlp_ref(x3, w_fc, b_fc, w_proj, b_proj)
    assert jnp.allclose(out3, ref3, atol=2e-3, rtol=1e-2), "ragged-tile path mismatch vs reference"

    print("KERNEL_OK")
</pallas_src>

<mosaic_0001>
module attributes {stable_mosaic.version = 11 : i64} {
  func.func @_mlp_kernel_resident(%arg0: i32, %arg1: memref<16x32xf32, #tpu.memory_space<vmem>>, %arg2: memref<32x128xbf16, #tpu.memory_space<vmem>>, %arg3: memref<1x128xf32, #tpu.memory_space<vmem>>, %arg4: memref<128x32xbf16, #tpu.memory_space<vmem>>, %arg5: memref<1x32xf32, #tpu.memory_space<vmem>>, %arg6: memref<16x32xf32, #tpu.memory_space<vmem>>) attributes {dimension_semantics = [#tpu.dimension_semantics<parallel>], iteration_bounds = array<i64: 1>, scalar_prefetch = 0 : i64, scratch_operands = 0 : i64, tpu.core_type = #tpu.core_type<tc>, window_params = [{transform_indices = @transform_0, window_bounds = array<i64: 16, 32>}, {pipeline_mode = #tpu.pipeline_mode<synchronous>, transform_indices = @transform_1, window_bounds = array<i64: 32, 128>}, {pipeline_mode = #tpu.pipeline_mode<synchronous>, transform_indices = @transform_2, window_bounds = array<i64: 1, 128>}, {pipeline_mode = #tpu.pipeline_mode<synchronous>, transform_indices = @transform_3, window_bounds = array<i64: 128, 32>}, {pipeline_mode = #tpu.pipeline_mode<synchronous>, transform_indices = @transform_4, window_bounds = array<i64: 1, 32>}, {transform_indices = @transform_5, window_bounds = array<i64: 16, 32>}]} {
    %c0 = arith.constant 0 : index
    %c0_0 = arith.constant 0 : index
    %0 = vector.load %arg1[%c0, %c0_0] : memref<16x32xf32, #tpu.memory_space<vmem>>, vector<16x32xf32>
    %1 = arith.truncf %0 : vector<16x32xf32> to vector<16x32xbf16>
    %c0_1 = arith.constant 0 : index
    %c0_2 = arith.constant 0 : index
    %2 = vector.load %arg2[%c0_1, %c0_2] : memref<32x128xbf16, #tpu.memory_space<vmem>>, vector<32x128xbf16>
    %cst = arith.constant dense<0.000000e+00> : vector<16x128xf32>
    %3 = tpu.matmul %1, %2, %cst {dimension_numbers = #tpu.dot_dimension_numbers<[1], [0], [0], [1], [0, 0, 1, 1], [], []>} : vector<16x32xbf16>, vector<32x128xbf16>, vector<16x128xf32> -> vector<16x128xf32>
    %c0_3 = arith.constant 0 : index
    %c0_4 = arith.constant 0 : index
    %4 = vector.load %arg3[%c0_3, %c0_4] : memref<1x128xf32, #tpu.memory_space<vmem>>, vector<1x128xf32>
    %5 = vector.broadcast %4 : vector<1x128xf32> to vector<16x128xf32>
    %6 = arith.addf %3, %5 : vector<16x128xf32>
    %7 = arith.truncf %6 : vector<16x128xf32> to vector<16x128xbf16>
    %cst_5 = arith.constant 5.000000e-01 : bf16
    %8 = vector.broadcast %cst_5 : bf16 to vector<16x128xbf16>
    %9 = arith.mulf %8, %7 : vector<16x128xbf16>
    %cst_6 = arith.constant 7.968750e-01 : bf16
    %10 = vector.broadcast %cst_6 : bf16 to vector<16x128xbf16>
    %11 = arith.mulf %10, %7 : vector<16x128xbf16>
    %12 = arith.mulf %7, %7 : vector<16x128xbf16>
    %13 = arith.mulf %12, %7 : vector<16x128xbf16>
    %cst_7 = arith.constant 3.564450e-02 : bf16
    %14 = vector.broadcast %cst_7 : bf16 to vector<16x128xbf16>
    %15 = arith.mulf %14, %13 : vector<16x128xbf16>
    %16 = arith.addf %11, %15 : vector<16x128xbf16>
    %17 = math.tanh %16 : vector<16x128xbf16>
    %cst_8 = arith.constant 1.000000e+00 : bf16
    %18 = vector.broadcast %cst_8 : bf16 to vector<16x128xbf16>
    %19 = arith.addf %18, %17 : vector<16x128xbf16>
    %20 = arith.mulf %9, %19 : vector<16x128xbf16>
    %c0_9 = arith.constant 0 : index
    %c0_10 = arith.constant 0 : index
    %21 = vector.load %arg4[%c0_9, %c0_10] : memref<128x32xbf16, #tpu.memory_space<vmem>>, vector<128x32xbf16>
    %cst_11 = arith.constant dense<0.000000e+00> : vector<16x32xf32>
    %22 = tpu.matmul %20, %21, %cst_11 {dimension_numbers = #tpu.dot_dimension_numbers<[1], [0], [0], [1], [0, 0, 1, 1], [], []>} : vector<16x128xbf16>, vector<128x32xbf16>, vector<16x32xf32> -> vector<16x32xf32>
    %c0_12 = arith.constant 0 : index
    %c0_13 = arith.constant 0 : index
    %23 = vector.load %arg5[%c0_12, %c0_13] : memref<1x32xf32, #tpu.memory_space<vmem>>, vector<1x32xf32>
    %24 = vector.broadcast %23 : vector<1x32xf32> to vector<16x32xf32>
    %25 = arith.addf %22, %24 : vector<16x32xf32>
    %c0_14 = arith.constant 0 : index
    %c0_15 = arith.constant 0 : index
    %26 = vector.load %arg6[%c0_14, %c0_15] : memref<16x32xf32, #tpu.memory_space<vmem>>, vector<16x32xf32>
    tpu.vector_store %arg6[%c0_14, %c0_15], %25 {strides = array<i32>} : memref<16x32xf32, #tpu.memory_space<vmem>>, vector<16x32xf32>,
    return
  }
  func.func @transform_0(%arg0: i32) -> (i32, i32) {
    %c0_i32 = arith.constant 0 : i32
    %c0_i32_0 = arith.constant 0 : i32
    return %arg0, %c0_i32 : i32, i32
  }
  func.func @transform_1(%arg0: i32) -> (i32, i32) {
    %c0_i32 = arith.constant 0 : i32
    %c0_i32_0 = arith.constant 0 : i32
    %c0_i32_1 = arith.constant 0 : i32
    return %c0_i32, %c0_i32_0 : i32, i32
  }
  func.func @transform_2(%arg0: i32) -> (i32, i32) {
    %c0_i32 = arith.constant 0 : i32
    %c0_i32_0 = arith.constant 0 : i32
    %c0_i32_1 = arith.constant 0 : i32
    return %c0_i32, %c0_i32_0 : i32, i32
  }
  func.func @transform_3(%arg0: i32) -> (i32, i32) {
    %c0_i32 = arith.constant 0 : i32
    %c0_i32_0 = arith.constant 0 : i32
    %c0_i32_1 = arith.constant 0 : i32
    return %c0_i32, %c0_i32_0 : i32, i32
  }
  func.func @transform_4(%arg0: i32) -> (i32, i32) {
    %c0_i32 = arith.constant 0 : i32
    %c0_i32_0 = arith.constant 0 : i32
    %c0_i32_1 = arith.constant 0 : i32
    return %c0_i32, %c0_i32_0 : i32, i32
  }
  func.func @transform_5(%arg0: i32) -> (i32, i32) {
    %c0_i32 = arith.constant 0 : i32
    %c0_i32_0 = arith.constant 0 : i32
    return %arg0, %c0_i32 : i32, i32
  }
}

</mosaic_0001>

<bundles_post_ra>
// kernel: tpu_custom_call.1
= control target key start
LH: loop header
LB: loop body
LE: loop exit
PB: predicated region body
PF: predicated region fallthrough
CT: control target
= control target key end

     0   :  { %v331_v1 = vmov 0.0   ;;  %vm332_vm0 = vmmov 0   ;;  %vm52_vm1 = vcmask 261120   ;;  %s423_s0 = inlined_call_operand.vmem [shape: f32[16,32], index: 0, kind: input, shape index: {}]   ;;  %s424_s1 = inlined_call_operand.vmem [shape: bf16[32,128], index: 1, kind: input, shape index: {}]   ;;  %s425_s2 = inlined_call_operand.vmem [shape: f32[1,128], index: 2, kind: input, shape index: {}]   ;;  %s426_s3 = inlined_call_operand.vmem [shape: bf16[128,32], index: 3, kind: input, shape index: {}]   ;;  %s427_s4 = inlined_call_operand.vmem [shape: f32[1,32], index: 4, kind: input, shape index: {}]   ;;  %s428_s5 = inlined_call_operand.hbm [shape: f32[16,32], index: 5, kind: output, shape index: {}]  }
   0x1   :  { %v295_v0 = vld [vmem:[%s424_s1] sm:$0xff]   ;;  %262 = vmatprep.subr.bf16.mxu0 %v331_v1  ;;  %270 = vmatprep.subr.bf16.mxu1 %v331_v1  ;;  %v296_v2 = vld [vmem:[%s424_s1 + $0x8] sm:$0xff]  }
   0x2   :  { %263 = vmatpush3.bf16.msra.mxu0 %v295_v0  ;;  %266 = vmatprep.mubr.msk.bf16.mxu0 %vm332_vm0, %v331_v1  ;;  %v26_v3 = vld [vmem:[%s423_s0] sm:$0xff]  ;;  %v27_v4 = vld [vmem:[%s423_s0 + $0x8] sm:$0xff] }
   0x3   :  { %264 = vmatprep.subr.bf16.mxu0 %v331_v1  ;;  %286 = vmatprep.mubr.msk.bf16.mxu1 %vm332_vm0, %v331_v1  ;;  %v28_v5 = vpack.c.bf16 %v27_v4, %v26_v3 }
   0x6   :  { %265 = vmatpush3.bf16.msra.mxu0 %v296_v2 }
   0x7   :  { %10 = vsyncpa [#allocation3], 0  ;;  %v297_v6 = vld [vmem:[%s426_s3] sm:$0xff]   ;;  %v298_v7 = vld [vmem:[%s426_s3 + $0x8] sm:$0xff]   ;;  %s333_s17 = smov [#allocation2]  }
   0x8   :  { %271 = vmatpush3.bf16.msra.mxu1 %v297_v6  ;;  %v299_v8 = vld [vmem:[%s426_s3 + $0x10] sm:$0xff]   ;;  %v300_v9 = vld [vmem:[%s426_s3 + $0x18] sm:$0xff]   ;;  %v301_v10 = vld [vmem:[%s426_s3 + $0x20] sm:$0xff]   ;;  %s226_s18 = sshll.u32 %s333_s17, 4  ;;  %s227_s18 = int_to_ptr.vmem [resolvable:$true] %s226_s18 }
   0x9   :  { %267 = vmatmul.mubr.msk.bf16.vlgmr.msra.gmra.mrb[0].mxu0 %vm52_vm1, %v28_v5  ;;  %272 = vmatprep.subr.bf16.mxu1 %v331_v1  ;;  %v302_v11 = vld [vmem:[%s426_s3 + $0x28] sm:$0xff]   ;;  %v303_v12 = vld [vmem:[%s426_s3 + $0x30] sm:$0xff]   ;;  %v304_v13 = vld [vmem:[%s426_s3 + $0x38] sm:$0xff]   ;;  %s307_s19 = scalar_lea.vmem %s227_s18, 256  ;;  %p312_p1 = scmp.lt.s32.totalorder %s227_s18, %s227_s18 }
   0xa   :  { %v237_v14 = vld [vmem:[%s425_s2] ss:$0 sm:$0xff]  ;;  %p308_p0 = scmp.ne.s32.totalorder %s227_s18, %s307_s19  ;;  %p313_p2 = scmp.lt.s32.totalorder %s307_s19, %s307_s19 }
   0xb   :  { %v241_v31 = vld [vmem:[%s427_s4] ss:$0 sm:$0xff] }
   0xc   :  { %273 = vmatpush3.bf16.msra.mxu1 %v298_v7  ;;  %p314_p3 = por %p313_p2, %p312_p1 }
   0xd   :  { %274 = vmatprep.subr.bf16.mxu1 %v331_v1 }
   0xe   :  { %p315_p4 = pnand %p314_p3, %p308_p0 }
  0x10   :  { %275 = vmatpush3.bf16.msra.mxu1 %v299_v8 }
  0x11   :  { %276 = vmatprep.subr.bf16.mxu1 %v331_v1 }
  0x14   :  { %277 = vmatpush3.bf16.msra.mxu1 %v300_v9 }
  0x15   :  { %278 = vmatprep.subr.bf16.mxu1 %v331_v1 }
  0x18   :  { %279 = vmatpush3.bf16.msra.mxu1 %v301_v10 }
  0x19   :  { %280 = vmatprep.subr.bf16.mxu1 %v331_v1 }
  0x1c   :  { %281 = vmatpush3.bf16.msra.mxu1 %v302_v11 }
  0x1d   :  { %282 = vmatprep.subr.bf16.mxu1 %v331_v1 }
  0x20   :  { %283 = vmatpush3.bf16.msra.mxu1 %v303_v12 }
  0x21   :  { %284 = vmatprep.subr.bf16.mxu1 %v331_v1 }
  0x24   :  { %285 = vmatpush3.bf16.msra.mxu1 %v304_v13 }
  0xdc   :  { %v90_v15 = vpop.f32.mrb[0].mxu0 }
  0xdd   :  { %v268_v16 = vpop.f32.mrb[1].mxu0  ;;  %v91_v18 = vadd.f32 %v237_v14, %v90_v15 }
  0xde   :  { %v93_v17 = vpop.f32.mrb[2].mxu0 }
  0xdf   :  { %v94_v19 = vadd.f32 %v237_v14, %v93_v17  ;;  %v269_v20 = vpop.f32.mrb[3].mxu0 }
  0xe1   :  { %v97_v21 = vpack.c.bf16 %v94_v19, %v91_v18 }
  0xe3   :  { %v100_v22 = vmul.bf16 %v97_v21, %v97_v21  ;;  %v99_v24 = vmul.bf16 1061961548, %v97_v21  ;;  %v98_v28 = vmul.bf16 1056980736, %v97_v21 }
  0xe5   :  { %v101_v23 = vmul.bf16 %v100_v22, %v97_v21 }
  0xe7   :  { %v102_v25 = vmul.bf16 1024605458, %v101_v23 }
  0xe9   :  { %v103_v26 = vadd.bf16 %v102_v25, %v99_v24 }
  0xeb   :  { %305 = vtanh.bf16 %v103_v26 }
  0xf6   :  { %v306_v27 = vpop.eup %305 }
  0xf7   :  { %v105_v29 = vadd.bf16 1065369472, %v306_v27 }
  0xf9   :  { %v106_v30 = vmul.bf16 %v105_v29, %v98_v28 }
  0xfb   :  { %287 = vmatmul.mubr.bf16.vlgmr.msra.gmra.mrb[0].mxu1 %v106_v30 }
 0x1ce   :  { %v212_v32 = vpop.f32.mrb[0].mxu1 }
 0x1cf   :  { %v213_v33 = vadd.f32 %v241_v31, %v212_v32  ;;  %v288_v34 = vpop.f32.mrb[1].mxu1 }
 0x1d0   :  { %v215_v35 = vpop.f32.mrb[2].mxu1 }
 0x1d1   :  { %219 = vst.msk [vmem:[#allocation2] sm:$0xff] %vm52_vm1, %v213_v33  ;;  %v216_v36 = vadd.f32 %v241_v31, %v215_v35  ;;  %v289_v37 = vpop.f32.mrb[3].mxu1 }
 0x1d3   :  { %220 = vst.msk [vmem:[#allocation2 + $0x8] sm:$0xff] %vm52_vm1, %v216_v36 }
 0x1d4   :  { %318 = shalt.err (!%p315_p4)
}
 0x1d5   :  { %s319_s21 = scalar_lea.hbm %s428_s5, 256 }
 0x1d6   :  { %p320_p5 = scmp.ne.s32.totalorder %s428_s5, %s319_s21  ;;  %p323_p6 = scmp.lt.u32.totalorder %s319_s21, %s428_s5 }
 0x1d8   :  { %p325_p7 = pnand %p323_p6, %p320_p5 }
 0x1da   :  { %328 = shalt.err (!%p325_p7)
}
 0x1db   :  { %s334_s26 = smov 128   ;;  %s335_s1 = smov 8  }
 0x1dc   :  { %232 = dma.vmem_to_hbm [thread:$0]  %s227_s18, 256, %s428_s5, [#allocation3], %s334_s26, %s334_s26, %s335_s1  }
 0x1dd   :  { %329 = dma.done.wait [#allocation3], 256  }
 0x1de   :  { %330 = vsyncadd [#allocation3], 4294967040 }
 0x1df   :  { %236 = vsyncpa [#allocation3], 1 }

</bundles_post_ra>
